<compile_context>
chip_gen: v7x
topology: tpu7x:2x2x1
jax: 0.10.0
libtpu: 0.0.40
codegen_flags: <defaults>
</compile_context>

<pallas_src>
import functools

import jax
import jax.numpy as jnp
from jax import lax
from jax.experimental import pallas as pl
from jax.experimental.pallas import tpu as pltpu


def _sample_kernel(theta_ref, base_ref, img_ref, out_ref, *, H, W, C, BT):
    """Separable bilinear grid_sample for one block of BT batches.

    theta_ref: (B*6,)       f32 SMEM  -- flattened affine params (global batch index)
    base_ref : (2, HW)      f32 VMEM  -- row 0: base x coords, row 1: base y coords
    img_ref  : (BT*C*H, W)  block     -- per-batch image rows stacked along sublanes
    out_ref  : (BT*C, HW)   block     -- lane-dense output rows
    """
    HW = H * W
    b0 = pl.program_id(0) * BT

    xb = base_ref[0:1, :]                                   # (1, HW) in [-1, 1]
    yb = base_ref[1:2, :]                                   # (1, HW) in [-1, 1]

    # Input row / column indices along sublanes; output pixels stay on lanes.
    h_idx = lax.broadcasted_iota(jnp.int32, (H, HW), 0)     # (H, HW)
    w_idx = lax.broadcasted_iota(jnp.int32, (W, HW), 0)     # (W, HW)

    for t in range(BT):                                     # static unroll, BT small
        off = (b0 + t) * 6
        t00 = theta_ref[off + 0]
        t01 = theta_ref[off + 1]
        t02 = theta_ref[off + 2]
        t10 = theta_ref[off + 3]
        t11 = theta_ref[off + 4]
        t12 = theta_ref[off + 5]

        # affine_grid (align_corners=False) fused with grid_sample unnormalize.
        gx = t00 * xb + t01 * yb + t02                      # (1, HW)
        gy = t10 * xb + t11 * yb + t12
        ix = (gx + 1.0) * (0.5 * W) - 0.5                   # source col (float)
        iy = (gy + 1.0) * (0.5 * H) - 0.5                   # source row (float)

        ix0f = jnp.floor(ix)
        iy0f = jnp.floor(iy)
        ix0 = ix0f.astype(jnp.int32)
        iy0 = iy0f.astype(jnp.int32)
        wx1 = ix - ix0f
        wy1 = iy - iy0f
        wx0 = 1.0 - wx1
        wy0 = 1.0 - wy1

        # Separable sampling weights (fused nested selects).  Out-of-range
        # ix0/iy0 (zeros padding) can never equal the in-range iota values, so
        # those corners contribute exactly 0 -- no masking, no index aliasing.
        colw = jnp.where(w_idx == ix0, wx0,
                         jnp.where(w_idx == ix0 + 1, wx1, 0.0))   # (W, HW)
        roww = jnp.where(h_idx == iy0, wy0,
                         jnp.where(h_idx == iy0 + 1, wy1, 0.0))   # (H, HW)

        # MXU: contract the image's W axis (stored last -> no transpose):
        #   u[(c,h), p_out] = sum_w img[c, h, w] * colw[w, p_out]
        img_cw = img_ref[t * C * H:(t + 1) * C * H, :].astype(jnp.float32)  # (C*H, W)
        u = jnp.dot(img_cw, colw, preferred_element_type=jnp.float32)       # (C*H, HW)

        # VPU/XLU: H-term multiply-reduce with the row weights:
        #   out[c, p_out] = sum_h roww[h, p_out] * u[(c,h), p_out]
        out2d = jnp.sum(u.reshape(C, H, HW) * roww[None, :, :], axis=1)     # (C, HW)
        out_ref[t * C:(t + 1) * C, :] = out2d.astype(out_ref.dtype)


def _pick_block_batches(B, C):
    """Smallest batches-per-block making BT*C a multiple of 8.

    Smallest aligned BT maximizes grid steps (pipelining + dual-TensorCore
    sharding on v7x) while keeping every block's second-to-last dim either a
    multiple of 8 (sublane-dense) or equal to the full array extent.
    """
    for bt in range(1, B + 1):
        if B % bt == 0 and (bt * C) % 8 == 0:
            return bt
    return B


def stn_forward(img, w1, b1, w2, b2):
    """img: (B, C, H, W) float32 NCHW (matches PyTorch). Returns (B, C, H, W)."""
    B, C, H, W = img.shape
    HW = H * W

    # ---- localization FC, hoisted out of the kernel (batched XLA matmul).
    # TODO(synk): Dropout(0.7) treated as identity (eval/inference semantics).
    x = img.reshape(B, C * HW).astype(jnp.float32)
    h1 = jnp.tanh(x @ w1 + b1.reshape(1, -1))
    theta = jnp.tanh(h1 @ w2 + b2.reshape(1, -1))            # (B, 6)

    # ---- static base sampling grid (align_corners=False), flattened (2, HW).
    xb = (2.0 * jnp.arange(W, dtype=jnp.float32) + 1.0) / W - 1.0
    yb = (2.0 * jnp.arange(H, dtype=jnp.float32) + 1.0) / H - 1.0
    base = jnp.stack([jnp.tile(xb, H), jnp.repeat(yb, W)], axis=0)   # (2, HW)

    BT = _pick_block_batches(B, C)
    assert B % BT == 0, "block batch count must divide B"

    img2 = img.reshape(B * C * H, W)        # free bitcast; blocks stay HBM-contiguous
    theta_flat = theta.reshape(B * 6)       # 1-D SMEM avoids 2-D SMEM padding blowup

    kernel = functools.partial(_sample_kernel, H=H, W=W, C=C, BT=BT)

    out = pl.pallas_call(
        kernel,
        out_shape=jax.ShapeDtypeStruct((B * C, HW), img.dtype),
        grid_spec=pltpu.PrefetchScalarGridSpec(
            num_scalar_prefetch=0,
            grid=(B // BT,),
            in_specs=[
                pl.BlockSpec(memory_space=pltpu.MemorySpace.SMEM),   # theta (B*6,)
                pl.BlockSpec((2, HW), lambda b: (0, 0)),             # base grid
                pl.BlockSpec((BT * C * H, W), lambda b: (b, 0)),     # image rows
            ],
            out_specs=pl.BlockSpec((BT * C, HW), lambda b: (b, 0)),
        ),
        compiler_params=pltpu.CompilerParams(
            dimension_semantics=("parallel",)),
    )(theta_flat, base, img2)
    return out.reshape(B, C, H, W)


def stn_reference(img, w1, b1, w2, b2):
    """Pure-JAX reference mirroring PyTorch affine_grid + grid_sample defaults."""
    B, C, H, W = img.shape
    x = img.reshape(B, -1)
    h1 = jnp.tanh(x @ w1 + b1.reshape(1, -1))
    theta = jnp.tanh(h1 @ w2 + b2.reshape(1, -1)).reshape(B, 2, 3)

    xb = (2.0 * jnp.arange(W, dtype=jnp.float32) + 1.0) / W - 1.0
    yb = (2.0 * jnp.arange(H, dtype=jnp.float32) + 1.0) / H - 1.0
    xb2 = jnp.broadcast_to(xb[None, :], (H, W))
    yb2 = jnp.broadcast_to(yb[:, None], (H, W))

    gx = (theta[:, 0, 0][:, None, None] * xb2 + theta[:, 0, 1][:, None, None] * yb2
          + theta[:, 0, 2][:, None, None])
    gy = (theta[:, 1, 0][:, None, None] * xb2 + theta[:, 1, 1][:, None, None] * yb2
          + theta[:, 1, 2][:, None, None])
    ix = ((gx + 1.0) * W - 1.0) * 0.5
    iy = ((gy + 1.0) * H - 1.0) * 0.5

    def sample_one(imgb, iyb, ixb):
        ix0 = jnp.floor(ixb).astype(jnp.int32)
        iy0 = jnp.floor(iyb).astype(jnp.int32)
        ix1 = ix0 + 1
        iy1 = iy0 + 1
        wx1 = ixb - ix0
        wx0 = 1.0 - wx1
        wy1 = iyb - iy0
        wy0 = 1.0 - wy1

        def corner(iyc, ixc, w):
            valid = (ixc >= 0) & (ixc < W) & (iyc >= 0) & (iyc < H)
            v = imgb[:, jnp.clip(iyc, 0, H - 1), jnp.clip(ixc, 0, W - 1)]
            return jnp.where(valid[None], w[None] * v, 0.0)

        return (corner(iy0, ix0, wy0 * wx0) + corner(iy0, ix1, wy0 * wx1)
                + corner(iy1, ix0, wy1 * wx0) + corner(iy1, ix1, wy1 * wx1))

    return jax.vmap(sample_one)(img, iy, ix)


if __name__ == "__main__":
    # Small shapes consistent with the module: h == w == pool_level so that
    # flatten(img) matches fc in_features = in_channel * pool_level**2.
    # H*W = 256 keeps the kernel's stored last dim lane-dense.
    B, C, H, W = 2, 4, 16, 16
    F = C * H * W

    key = jax.random.PRNGKey(0)
    k_img, k_w1, k_b1, k_w2 = jax.random.split(key, 4)

    img = jax.random.normal(k_img, (B, C, H, W), dtype=jnp.float32)

    # fc[0]: Linear(F, 20) — uniform init, stored transposed for x @ w1.
    bound1 = 1.0 / jnp.sqrt(jnp.float32(F))
    w1 = jax.random.uniform(k_w1, (F, 20), jnp.float32, -bound1, bound1)
    b1 = jax.random.uniform(k_b1, (20,), jnp.float32, -bound1, bound1)
    # Module init is w2 = 0, b2 = [1,0,0,0,1,0] (identity affine); use small
    # nonzero values here so theta varies per batch and the zeros-padding path
    # of grid_sample is exercised by the numerical check.
    w2 = 0.3 * jax.random.normal(k_w2, (20, 6), dtype=jnp.float32)
    b2 = jnp.array([1.0, 0.2, 0.5, -0.2, 1.0, -0.4], dtype=jnp.float32)

    out = jax.block_until_ready(stn_forward(img, w1, b1, w2, b2))
    ref = jax.block_until_ready(stn_reference(img, w1, b1, w2, b2))

    assert out.shape == (B, C, H, W)
    assert bool(jnp.all(jnp.isfinite(out)))
    assert bool(jnp.allclose(out, ref, atol=1e-4, rtol=1e-4)), "mismatch vs reference"

    print("KERNEL_OK")
</pallas_src>

<mosaic_0001>
module attributes {stable_mosaic.version = 11 : i64} {
  func.func @_sample_kernel(%arg0: i32, %arg1: memref<12xf32, #tpu.memory_space<smem>>, %arg2: memref<2x256xf32, #tpu.memory_space<vmem>>, %arg3: memref<128x16xf32, #tpu.memory_space<vmem>>, %arg4: memref<8x256xf32, #tpu.memory_space<vmem>>) attributes {dimension_semantics = [#tpu.dimension_semantics<parallel>], iteration_bounds = array<i64: 1>, scalar_prefetch = 0 : i64, scratch_operands = 0 : i64, tpu.core_type = #tpu.core_type<tc>, window_params = [{transform_indices = @transform_0, window_bounds = array<i64: 12>}, {pipeline_mode = #tpu.pipeline_mode<synchronous>, transform_indices = @transform_1, window_bounds = array<i64: 2, 256>}, {transform_indices = @transform_2, window_bounds = array<i64: 128, 16>}, {transform_indices = @transform_3, window_bounds = array<i64: 8, 256>}]} {
    %c2_i32 = arith.constant 2 : i32
    %0 = arith.muli %arg0, %c2_i32 : i32
    %c0 = arith.constant 0 : index
    %c0_0 = arith.constant 0 : index
    %1 = vector.load %arg2[%c0, %c0_0] : memref<2x256xf32, #tpu.memory_space<vmem>>, vector<1x256xf32>
    %c1 = arith.constant 1 : index
    %c0_1 = arith.constant 0 : index
    %2 = vector.load %arg2[%c1, %c0_1] : memref<2x256xf32, #tpu.memory_space<vmem>>, vector<1x256xf32>
    %3 = tpu.iota {dimensions = array<i32: 0>} : vector<16x256xi32>
    %4 = tpu.iota {dimensions = array<i32: 0>} : vector<16x256xi32>
    %c0_i32 = arith.constant 0 : i32
    %5 = arith.addi %0, %c0_i32 : i32
    %c6_i32 = arith.constant 6 : i32
    %6 = arith.muli %5, %c6_i32 : i32
    %c0_i32_2 = arith.constant 0 : i32
    %7 = arith.addi %6, %c0_i32_2 : i32
    %8 = arith.index_cast %7 : i32 to index
    %9 = memref.load %arg1[%8] : memref<12xf32, #tpu.memory_space<smem>>
    %c1_i32 = arith.constant 1 : i32
    %10 = arith.addi %6, %c1_i32 : i32
    %11 = arith.index_cast %10 : i32 to index
    %12 = memref.load %arg1[%11] : memref<12xf32, #tpu.memory_space<smem>>
    %c2_i32_3 = arith.constant 2 : i32
    %13 = arith.addi %6, %c2_i32_3 : i32
    %14 = arith.index_cast %13 : i32 to index
    %15 = memref.load %arg1[%14] : memref<12xf32, #tpu.memory_space<smem>>
    %c3_i32 = arith.constant 3 : i32
    %16 = arith.addi %6, %c3_i32 : i32
    %17 = arith.index_cast %16 : i32 to index
    %18 = memref.load %arg1[%17] : memref<12xf32, #tpu.memory_space<smem>>
    %c4_i32 = arith.constant 4 : i32
    %19 = arith.addi %6, %c4_i32 : i32
    %20 = arith.index_cast %19 : i32 to index
    %21 = memref.load %arg1[%20] : memref<12xf32, #tpu.memory_space<smem>>
    %c5_i32 = arith.constant 5 : i32
    %22 = arith.addi %6, %c5_i32 : i32
    %23 = arith.index_cast %22 : i32 to index
    %24 = memref.load %arg1[%23] : memref<12xf32, #tpu.memory_space<smem>>
    %25 = vector.broadcast %9 : f32 to vector<1x256xf32>
    %26 = arith.mulf %25, %1 : vector<1x256xf32>
    %27 = vector.broadcast %12 : f32 to vector<1x256xf32>
    %28 = arith.mulf %27, %2 : vector<1x256xf32>
    %29 = arith.addf %26, %28 : vector<1x256xf32>
    %30 = vector.broadcast %15 : f32 to vector<1x256xf32>
    %31 = arith.addf %29, %30 : vector<1x256xf32>
    %32 = vector.broadcast %18 : f32 to vector<1x256xf32>
    %33 = arith.mulf %32, %1 : vector<1x256xf32>
    %34 = vector.broadcast %21 : f32 to vector<1x256xf32>
    %35 = arith.mulf %34, %2 : vector<1x256xf32>
    %36 = arith.addf %33, %35 : vector<1x256xf32>
    %37 = vector.broadcast %24 : f32 to vector<1x256xf32>
    %38 = arith.addf %36, %37 : vector<1x256xf32>
    %cst = arith.constant 1.000000e+00 : f32
    %39 = vector.broadcast %cst : f32 to vector<1x256xf32>
    %40 = arith.addf %31, %39 : vector<1x256xf32>
    %cst_4 = arith.constant 8.000000e+00 : f32
    %41 = vector.broadcast %cst_4 : f32 to vector<1x256xf32>
    %42 = arith.mulf %40, %41 : vector<1x256xf32>
    %cst_5 = arith.constant 5.000000e-01 : f32
    %43 = vector.broadcast %cst_5 : f32 to vector<1x256xf32>
    %44 = arith.subf %42, %43 : vector<1x256xf32>
    %cst_6 = arith.constant 1.000000e+00 : f32
    %45 = vector.broadcast %cst_6 : f32 to vector<1x256xf32>
    %46 = arith.addf %38, %45 : vector<1x256xf32>
    %cst_7 = arith.constant 8.000000e+00 : f32
    %47 = vector.broadcast %cst_7 : f32 to vector<1x256xf32>
    %48 = arith.mulf %46, %47 : vector<1x256xf32>
    %cst_8 = arith.constant 5.000000e-01 : f32
    %49 = vector.broadcast %cst_8 : f32 to vector<1x256xf32>
    %50 = arith.subf %48, %49 : vector<1x256xf32>
    %51 = math.floor %44 : vector<1x256xf32>
    %52 = math.floor %50 : vector<1x256xf32>
    %53 = arith.fptosi %51 : vector<1x256xf32> to vector<1x256xi32>
    %54 = arith.fptosi %52 : vector<1x256xf32> to vector<1x256xi32>
    %55 = arith.subf %44, %51 : vector<1x256xf32>
    %56 = arith.subf %50, %52 : vector<1x256xf32>
    %cst_9 = arith.constant 1.000000e+00 : f32
    %57 = vector.broadcast %cst_9 : f32 to vector<1x256xf32>
    %58 = arith.subf %57, %55 : vector<1x256xf32>
    %cst_10 = arith.constant 1.000000e+00 : f32
    %59 = vector.broadcast %cst_10 : f32 to vector<1x256xf32>
    %60 = arith.subf %59, %56 : vector<1x256xf32>
    %61 = vector.broadcast %53 : vector<1x256xi32> to vector<16x256xi32>
    %62 = arith.cmpi eq, %4, %61 : vector<16x256xi32>
    %c1_i32_11 = arith.constant 1 : i32
    %63 = vector.broadcast %c1_i32_11 : i32 to vector<1x256xi32>
    %64 = arith.addi %53, %63 : vector<1x256xi32>
    %65 = vector.broadcast %64 : vector<1x256xi32> to vector<16x256xi32>
    %66 = arith.cmpi eq, %4, %65 : vector<16x256xi32>
    %cst_12 = arith.constant 0.000000e+00 : f32
    %67 = vector.shape_cast %55 : vector<1x256xf32> to vector<1x256xf32>
    %68 = vector.broadcast %67 : vector<1x256xf32> to vector<16x256xf32>
    %69 = vector.broadcast %cst_12 : f32 to vector<16x256xf32>
    %70 = arith.select %66, %68, %69 : vector<16x256xi1>, vector<16x256xf32>
    %71 = vector.shape_cast %58 : vector<1x256xf32> to vector<1x256xf32>
    %72 = vector.broadcast %71 : vector<1x256xf32> to vector<16x256xf32>
    %73 = arith.select %62, %72, %70 : vector<16x256xi1>, vector<16x256xf32>
    %74 = vector.broadcast %54 : vector<1x256xi32> to vector<16x256xi32>
    %75 = arith.cmpi eq, %3, %74 : vector<16x256xi32>
    %c1_i32_13 = arith.constant 1 : i32
    %76 = vector.broadcast %c1_i32_13 : i32 to vector<1x256xi32>
    %77 = arith.addi %54, %76 : vector<1x256xi32>
    %78 = vector.broadcast %77 : vector<1x256xi32> to vector<16x256xi32>
    %79 = arith.cmpi eq, %3, %78 : vector<16x256xi32>
    %cst_14 = arith.constant 0.000000e+00 : f32
    %80 = vector.shape_cast %56 : vector<1x256xf32> to vector<1x256xf32>
    %81 = vector.broadcast %80 : vector<1x256xf32> to vector<16x256xf32>
    %82 = vector.broadcast %cst_14 : f32 to vector<16x256xf32>
    %83 = arith.select %79, %81, %82 : vector<16x256xi1>, vector<16x256xf32>
    %84 = vector.shape_cast %60 : vector<1x256xf32> to vector<1x256xf32>
    %85 = vector.broadcast %84 : vector<1x256xf32> to vector<16x256xf32>
    %86 = arith.select %75, %85, %83 : vector<16x256xi1>, vector<16x256xf32>
    %c0_15 = arith.constant 0 : index
    %c0_16 = arith.constant 0 : index
    %87 = vector.load %arg3[%c0_15, %c0_16] : memref<128x16xf32, #tpu.memory_space<vmem>>, vector<64x16xf32>
    %cst_17 = arith.constant dense<0.000000e+00> : vector<64x256xf32>
    %88 = tpu.matmul %87, %73, %cst_17 {dimension_numbers = #tpu.dot_dimension_numbers<[1], [0], [0], [1], [0, 0, 1, 1], [], []>} : vector<64x16xf32>, vector<16x256xf32>, vector<64x256xf32> -> vector<64x256xf32>
    %89 = vector.shape_cast %88 : vector<64x256xf32> to vector<4x16x256xf32>
    %90 = vector.shape_cast %86 : vector<16x256xf32> to vector<1x16x256xf32>
    %91 = vector.broadcast %90 : vector<1x16x256xf32> to vector<4x16x256xf32>
    %92 = arith.mulf %89, %91 : vector<4x16x256xf32>
    %cst_18 = arith.constant dense<0.000000e+00> : vector<4x256xf32>
    %93 = vector.multi_reduction <add>, %92, %cst_18 [1] : vector<4x16x256xf32> to vector<4x256xf32>
    %c0_19 = arith.constant 0 : index
    %c0_20 = arith.constant 0 : index
    %94 = vector.load %arg4[%c0_19, %c0_20] : memref<8x256xf32, #tpu.memory_space<vmem>>, vector<4x256xf32>
    tpu.vector_store %arg4[%c0_19, %c0_20], %93 {strides = array<i32>} : memref<8x256xf32, #tpu.memory_space<vmem>>, vector<4x256xf32>,
    %c1_i32_21 = arith.constant 1 : i32
    %95 = arith.addi %0, %c1_i32_21 : i32
    %c6_i32_22 = arith.constant 6 : i32
    %96 = arith.muli %95, %c6_i32_22 : i32
    %c0_i32_23 = arith.constant 0 : i32
    %97 = arith.addi %96, %c0_i32_23 : i32
    %98 = arith.index_cast %97 : i32 to index
    %99 = memref.load %arg1[%98] : memref<12xf32, #tpu.memory_space<smem>>
    %c1_i32_24 = arith.constant 1 : i32
    %100 = arith.addi %96, %c1_i32_24 : i32
    %101 = arith.index_cast %100 : i32 to index
    %102 = memref.load %arg1[%101] : memref<12xf32, #tpu.memory_space<smem>>
    %c2_i32_25 = arith.constant 2 : i32
    %103 = arith.addi %96, %c2_i32_25 : i32
    %104 = arith.index_cast %103 : i32 to index
    %105 = memref.load %arg1[%104] : memref<12xf32, #tpu.memory_space<smem>>
    %c3_i32_26 = arith.constant 3 : i32
    %106 = arith.addi %96, %c3_i32_26 : i32
    %107 = arith.index_cast %106 : i32 to index
    %108 = memref.load %arg1[%107] : memref<12xf32, #tpu.memory_space<smem>>
    %c4_i32_27 = arith.constant 4 : i32
    %109 = arith.addi %96, %c4_i32_27 : i32
    %110 = arith.index_cast %109 : i32 to index
    %111 = memref.load %arg1[%110] : memref<12xf32, #tpu.memory_space<smem>>
    %c5_i32_28 = arith.constant 5 : i32
    %112 = arith.addi %96, %c5_i32_28 : i32
    %113 = arith.index_cast %112 : i32 to index
    %114 = memref.load %arg1[%113] : memref<12xf32, #tpu.memory_space<smem>>
    %115 = vector.broadcast %99 : f32 to vector<1x256xf32>
    %116 = arith.mulf %115, %1 : vector<1x256xf32>
    %117 = vector.broadcast %102 : f32 to vector<1x256xf32>
    %118 = arith.mulf %117, %2 : vector<1x256xf32>
    %119 = arith.addf %116, %118 : vector<1x256xf32>
    %120 = vector.broadcast %105 : f32 to vector<1x256xf32>
    %121 = arith.addf %119, %120 : vector<1x256xf32>
    %122 = vector.broadcast %108 : f32 to vector<1x256xf32>
    %123 = arith.mulf %122, %1 : vector<1x256xf32>
    %124 = vector.broadcast %111 : f32 to vector<1x256xf32>
    %125 = arith.mulf %124, %2 : vector<1x256xf32>
    %126 = arith.addf %123, %125 : vector<1x256xf32>
    %127 = vector.broadcast %114 : f32 to vector<1x256xf32>
    %128 = arith.addf %126, %127 : vector<1x256xf32>
    %cst_29 = arith.constant 1.000000e+00 : f32
    %129 = vector.broadcast %cst_29 : f32 to vector<1x256xf32>
    %130 = arith.addf %121, %129 : vector<1x256xf32>
    %cst_30 = arith.constant 8.000000e+00 : f32
    %131 = vector.broadcast %cst_30 : f32 to vector<1x256xf32>
    %132 = arith.mulf %130, %131 : vector<1x256xf32>
    %cst_31 = arith.constant 5.000000e-01 : f32
    %133 = vector.broadcast %cst_31 : f32 to vector<1x256xf32>
    %134 = arith.subf %132, %133 : vector<1x256xf32>
    %cst_32 = arith.constant 1.000000e+00 : f32
    %135 = vector.broadcast %cst_32 : f32 to vector<1x256xf32>
    %136 = arith.addf %128, %135 : vector<1x256xf32>
    %cst_33 = arith.constant 8.000000e+00 : f32
    %137 = vector.broadcast %cst_33 : f32 to vector<1x256xf32>
    %138 = arith.mulf %136, %137 : vector<1x256xf32>
    %cst_34 = arith.constant 5.000000e-01 : f32
    %139 = vector.broadcast %cst_34 : f32 to vector<1x256xf32>
    %140 = arith.subf %138, %139 : vector<1x256xf32>
    %141 = math.floor %134 : vector<1x256xf32>
    %142 = math.floor %140 : vector<1x256xf32>
    %143 = arith.fptosi %141 : vector<1x256xf32> to vector<1x256xi32>
    %144 = arith.fptosi %142 : vector<1x256xf32> to vector<1x256xi32>
    %145 = arith.subf %134, %141 : vector<1x256xf32>
    %146 = arith.subf %140, %142 : vector<1x256xf32>
    %cst_35 = arith.constant 1.000000e+00 : f32
    %147 = vector.broadcast %cst_35 : f32 to vector<1x256xf32>
    %148 = arith.subf %147, %145 : vector<1x256xf32>
    %cst_36 = arith.constant 1.000000e+00 : f32
    %149 = vector.broadcast %cst_36 : f32 to vector<1x256xf32>
    %150 = arith.subf %149, %146 : vector<1x256xf32>
    %151 = vector.broadcast %143 : vector<1x256xi32> to vector<16x256xi32>
    %152 = arith.cmpi eq, %4, %151 : vector<16x256xi32>
    %c1_i32_37 = arith.constant 1 : i32
    %153 = vector.broadcast %c1_i32_37 : i32 to vector<1x256xi32>
    %154 = arith.addi %143, %153 : vector<1x256xi32>
    %155 = vector.broadcast %154 : vector<1x256xi32> to vector<16x256xi32>
    %156 = arith.cmpi eq, %4, %155 : vector<16x256xi32>
    %cst_38 = arith.constant 0.000000e+00 : f32
    %157 = vector.shape_cast %145 : vector<1x256xf32> to vector<1x256xf32>
    %158 = vector.broadcast %157 : vector<1x256xf32> to vector<16x256xf32>
    %159 = vector.broadcast %cst_38 : f32 to vector<16x256xf32>
    %160 = arith.select %156, %158, %159 : vector<16x256xi1>, vector<16x256xf32>
    %161 = vector.shape_cast %148 : vector<1x256xf32> to vector<1x256xf32>
    %162 = vector.broadcast %161 : vector<1x256xf32> to vector<16x256xf32>
    %163 = arith.select %152, %162, %160 : vector<16x256xi1>, vector<16x256xf32>
    %164 = vector.broadcast %144 : vector<1x256xi32> to vector<16x256xi32>
    %165 = arith.cmpi eq, %3, %164 : vector<16x256xi32>
    %c1_i32_39 = arith.constant 1 : i32
    %166 = vector.broadcast %c1_i32_39 : i32 to vector<1x256xi32>
    %167 = arith.addi %144, %166 : vector<1x256xi32>
    %168 = vector.broadcast %167 : vector<1x256xi32> to vector<16x256xi32>
    %169 = arith.cmpi eq, %3, %168 : vector<16x256xi32>
    %cst_40 = arith.constant 0.000000e+00 : f32
    %170 = vector.shape_cast %146 : vector<1x256xf32> to vector<1x256xf32>
    %171 = vector.broadcast %170 : vector<1x256xf32> to vector<16x256xf32>
    %172 = vector.broadcast %cst_40 : f32 to vector<16x256xf32>
    %173 = arith.select %169, %171, %172 : vector<16x256xi1>, vector<16x256xf32>
    %174 = vector.shape_cast %150 : vector<1x256xf32> to vector<1x256xf32>
    %175 = vector.broadcast %174 : vector<1x256xf32> to vector<16x256xf32>
    %176 = arith.select %165, %175, %173 : vector<16x256xi1>, vector<16x256xf32>
    %c64 = arith.constant 64 : index
    %c0_41 = arith.constant 0 : index
    %177 = vector.load %arg3[%c64, %c0_41] : memref<128x16xf32, #tpu.memory_space<vmem>>, vector<64x16xf32>
    %cst_42 = arith.constant dense<0.000000e+00> : vector<64x256xf32>
    %178 = tpu.matmul %177, %163, %cst_42 {dimension_numbers = #tpu.dot_dimension_numbers<[1], [0], [0], [1], [0, 0, 1, 1], [], []>} : vector<64x16xf32>, vector<16x256xf32>, vector<64x256xf32> -> vector<64x256xf32>
    %179 = vector.shape_cast %178 : vector<64x256xf32> to vector<4x16x256xf32>
    %180 = vector.shape_cast %176 : vector<16x256xf32> to vector<1x16x256xf32>
    %181 = vector.broadcast %180 : vector<1x16x256xf32> to vector<4x16x256xf32>
    %182 = arith.mulf %179, %181 : vector<4x16x256xf32>
    %cst_43 = arith.constant dense<0.000000e+00> : vector<4x256xf32>
    %183 = vector.multi_reduction <add>, %182, %cst_43 [1] : vector<4x16x256xf32> to vector<4x256xf32>
    %c4 = arith.constant 4 : index
    %c0_44 = arith.constant 0 : index
    %184 = vector.load %arg4[%c4, %c0_44] : memref<8x256xf32, #tpu.memory_space<vmem>>, vector<4x256xf32>
    tpu.vector_store %arg4[%c4, %c0_44], %183 {strides = array<i32>} : memref<8x256xf32, #tpu.memory_space<vmem>>, vector<4x256xf32>,
    return
  }
  func.func @transform_0(%arg0: i32) -> i32 {
    %c0_i32 = arith.constant 0 : i32
    %c0_i32_0 = arith.constant 0 : i32
    return %c0_i32 : i32
  }
  func.func @transform_1(%arg0: i32) -> (i32, i32) {
    %c0_i32 = arith.constant 0 : i32
    %c0_i32_0 = arith.constant 0 : i32
    %c0_i32_1 = arith.constant 0 : i32
    return %c0_i32, %c0_i32_0 : i32, i32
  }
  func.func @transform_2(%arg0: i32) -> (i32, i32) {
    %c0_i32 = arith.constant 0 : i32
    %c0_i32_0 = arith.constant 0 : i32
    return %arg0, %c0_i32 : i32, i32
  }
  func.func @transform_3(%arg0: i32) -> (i32, i32) {
    %c0_i32 = arith.constant 0 : i32
    %c0_i32_0 = arith.constant 0 : i32
    return %arg0, %c0_i32 : i32, i32
  }
}

</mosaic_0001>

<bundles_post_ra>
// kernel: tpu_custom_call.1
= control target key start
LH: loop header
LB: loop body
LE: loop exit
PB: predicated region body
PF: predicated region fallthrough
CT: control target
= control target key end

     0   :  { %8 = vsyncpa [#allocation4], 0  ;;  %s1222_s0 = inlined_call_operand.vmem [shape: f32[12], index: 0, kind: input, shape index: {}]   ;;  %s1223_s1 = inlined_call_operand.vmem [shape: f32[2,256], index: 1, kind: input, shape index: {}]   ;;  %s1224_s2 = inlined_call_operand.vmem [shape: f32[128,16], index: 2, kind: input, shape index: {}]   ;;  %s1225_s3 = inlined_call_operand.hbm [shape: f32[8,256], index: 3, kind: output, shape index: {}]  }
   0x1   :  { %9 = vsyncpa [#allocation3], 0  ;;  %s16_s14 = sshll.u32 %s1222_s0, 4  ;;  %s17_s14 = int_to_ptr.vmem [resolvable:$true] %s16_s14 }
   0x2   :  { %s879_s15 = scalar_lea.vmem %s17_s14, 16  ;;  %p884_p1 = scmp.lt.s32.totalorder %s17_s14, %s17_s14 }
   0x3   :  { %p880_p0 = scmp.ne.s32.totalorder %s17_s14, %s879_s15  ;;  %p885_p2 = scmp.lt.s32.totalorder %s879_s15, %s879_s15 }
   0x5   :  { %p886_p3 = por %p885_p2, %p884_p1 }
   0x7   :  { %p887_p4 = pnand %p886_p3, %p880_p0 }
   0x9   :  { %890 = shalt.err (!%p887_p4)
}
   0xa   :  { %s917_s16 = smov [#allocation2]  }
   0xb   :  { %19 = dma.vmem_to_smem %s17_s14, 16, %s917_s16, [#allocation4]  }
   0xc   :  { %913 = dma.done.wait [#allocation4], 16  }
   0xd   :  { %914 = vsyncadd [#allocation4], 4294967280 }
   0xe   :  { %27 = sfence }
   0xf   :  { %s36_s17 = sld [smem:[#allocation2]]  ;;  %s829_s18 = sld [smem:[#allocation2 + $0x1]]  ;;  %v918_v0 = vmov 0.0   ;;  %v948_v1 = vld [vmem:[%s1223_s1] ss:$2 sm:$0x3]  ;;  %v32_v16 = vlaneseq }
  0x10   :  { %s830_s19 = sld [smem:[#allocation2 + $0x2]]  ;;  %s844_s20 = sld [smem:[#allocation2 + $0x6]]  ;;  %282 = vmatprep.mubr.f32.mxu0 %v918_v0  ;;  %671 = vmatprep.mubr.f32.mxu1 %v918_v0  ;;  %v953_v2 = vld [vmem:[%s1223_s1 + $0x1] ss:$2 sm:$0x3] }
  0x11   :  { %s845_s0 = sld [smem:[#allocation2 + $0x7]]  ;;  %s846_s21 = sld [smem:[#allocation2 + $0x8]]  ;;  %v959_v21 = vshrl.u32 %v32_v16, 7  ;;  %v575_v16 = vld [vmem:[%s1224_s2 + $0x40] sm:$0xff] }
  0x12   :  { %s831_s28 = sld [smem:[#allocation2 + $0x3]]  ;;  %s832_s29 = sld [smem:[#allocation2 + $0x4]] }
  0x13   :  { %v962_v26 = vsub.s32 1, %v959_v21  ;;  %v965_v27 = vsub.s32 0, %v959_v21  ;;  %v968_v31 = vadd.s32 8, %v959_v21  ;;  %s847_s30 = sld [smem:[#allocation2 + $0x9]]  ;;  %s848_s4 = sld [smem:[#allocation2 + $0xa]] }
  0x14   :  { %s833_s5 = sld [smem:[#allocation2 + $0x5]]  ;;  %s849_s6 = sld [smem:[#allocation2 + $0xb]] }
  0x15   :  { %v47_v3 = vstv %s36_s17  ;;  %v49_v4 = vstv %s829_s18 }
  0x16   :  { %v48_v5 = vmul.f32 %v47_v3, %v948_v1  ;;  %v50_v6 = vmul.f32 %v953_v2, %v49_v4  ;;  %v437_v7 = vstv %s844_s20  ;;  %v52_v8 = vstv %s830_s19 }
  0x17   :  { %v438_v9 = vmul.f32 %v437_v7, %v948_v1  ;;  %v439_v10 = vstv %s845_s0  ;;  %v442_v13 = vstv %s846_s21 }
  0x18   :  { %v51_v11 = vadd.f32 %v50_v6, %v48_v5  ;;  %v440_v12 = vmul.f32 %v953_v2, %v439_v10 }
  0x1a   :  { %v53_v14 = vadd.f32 %v52_v8, %v51_v11  ;;  %v441_v15 = vadd.f32 %v440_v12, %v438_v9  ;;  %v185_v12 = vld [vmem:[%s1224_s2] sm:$0xff] }
  0x1c   :  { %v61_v17 = vadd.f32 1.0, %v53_v14  ;;  %v443_v18 = vadd.f32 %v442_v13, %v441_v15 }
  0x1e   :  { %v62_v19 = vmul.f32 8.0, %v61_v17  ;;  %v451_v20 = vadd.f32 1.0, %v443_v18  ;;  %v186_v17 = vld [vmem:[%s1224_s2 + $0x8] sm:$0xff] }
  0x1f   :  { %v576_v18 = vld [vmem:[%s1224_s2 + $0x48] sm:$0xff] }
  0x20   :  { %v834_v22 = vadd.f32 -0.5, %v62_v19  ;;  %v452_v23 = vmul.f32 8.0, %v451_v20  ;;  %v187_v19 = vld [vmem:[%s1224_s2 + $0x10] sm:$0xff] }
  0x21   :  { %v577_v20 = vld [vmem:[%s1224_s2 + $0x50] sm:$0xff] }
  0x22   :  { %v67_v24 = vfloor.f32 %v834_v22  ;;  %v850_v25 = vadd.f32 -0.5, %v452_v23  ;;  %v578_v23 = vld [vmem:[%s1224_s2 + $0x58] sm:$0xff] }
  0x24   :  { %v868_v28 = vtrunc.f32 %v67_v24  ;;  %v71_v29 = vsub.f32 %v834_v22, %v67_v24  ;;  %v457_v30 = vfloor.f32 %v850_v25  ;;  %v188_v22 = vld [vmem:[%s1224_s2 + $0x18] sm:$0xff]  ;;  %v189_v24 = vld [vmem:[%s1224_s2 + $0x20] sm:$0xff] }
  0x26   :  { %v869_v32 = vcvt.f32.s32 %v868_v28  ;;  %v73_v33 = vsub.f32 1.0, %v71_v29  ;;  %v872_v34 = vtrunc.f32 %v457_v30  ;;  %v108_v35 = vrot.slane %v71_v29, %v962_v26  ;;  %v190_v28 = vld [vmem:[%s1224_s2 + $0x28] sm:$0xff] }
  0x27   :  { %v461_v36 = vsub.f32 %v850_v25, %v457_v30  ;;  %v104_v37 = vrot.slane %v71_v29, %v965_v27  ;;  %v579_v25 = vld [vmem:[%s1224_s2 + $0x60] sm:$0xff]  ;;  %v580_v29 = vld [vmem:[%s1224_s2 + $0x68] sm:$0xff]  ;;  %v191_v30 = vld [vmem:[%s1224_s2 + $0x30] sm:$0xff] }
  0x28   :  { %v82_v38 = vrot.slane %v869_v32, %v962_v26  ;;  %v87_v39 = vadd.s32 1, %v869_v32  ;;  %v123_v40 = vrot.slane %v73_v33, %v962_v26  ;;  %v873_v41 = vcvt.f32.s32 %v872_v34  ;;  %v582_v34 = vld [vmem:[%s1224_s2 + $0x78] sm:$0xff] }
  0x29   :  { %v463_v42 = vsub.f32 1.0, %v461_v36  ;;  %v498_v43 = vrot.slane %v461_v36, %v962_v26  ;;  %v78_v44 = vrot.slane %v869_v32, %v965_v27  ;;  %v119_v45 = vrot.slane %v73_v33, %v965_v27  ;;  %v581_v32 = vld [vmem:[%s1224_s2 + $0x70] sm:$0xff]  ;;  %v192_v33 = vld [vmem:[%s1224_s2 + $0x38] sm:$0xff]  ;;  %s919_s2 = smov [#allocation5]  }
  0x2a   :  { %vm84_vm0 = vcmp.eq.s32.totalorder %v959_v21, %v82_v38  ;;  %vm86_vm1 = vcmp.eq.s32.totalorder %v968_v31, %v82_v38  ;;  %v95_v46 = vrot.slane %v87_v39, %v962_v26  ;;  %v472_v47 = vrot.slane %v873_v41, %v962_v26  ;;  %s819_s7 = sshll.u32 %s919_s2, 4  ;;  %s820_s7 = int_to_ptr.vmem [resolvable:$true] %s819_s7 }
  0x2b   :  { %v477_v48 = vadd.s32 1, %v873_v41  ;;  %v513_v49 = vrot.slane %v463_v42, %v962_v26  ;;  %vm83_vm2 = vcmp.eq.s32.totalorder %v959_v21, %v78_v44  ;;  %vm85_vm3 = vcmp.eq.s32.totalorder %v968_v31, %v78_v44  ;;  %s891_s8 = scalar_lea.vmem %s820_s7, 256  ;;  %p896_p6 = scmp.lt.s32.totalorder %s820_s7, %s820_s7 }
  0x2c   :  { %vm97_vm4 = vcmp.eq.s32.totalorder %v959_v21, %v95_v46  ;;  %vm99_vm5 = vcmp.eq.s32.totalorder %v968_v31, %v95_v46  ;;  %vm474_vm6 = vcmp.eq.s32.totalorder %v959_v21, %v472_v47  ;;  %vm476_vm7 = vcmp.eq.s32.totalorder %v968_v31, %v472_v47  ;;  %p892_p5 = scmp.ne.s32.totalorder %s820_s7, %s891_s8  ;;  %p897_p7 = scmp.lt.s32.totalorder %s891_s8, %s891_s8 }
  0x2d   :  { %v112_v50 = vsel %vm97_vm4, %v108_v35, 0.0  ;;  %v114_v51 = vsel %vm99_vm5, %v108_v35, 0.0  ;;  %v485_v52 = vrot.slane %v477_v48, %v962_v26  ;;  %v91_v53 = vrot.slane %v87_v39, %v965_v27 }
  0x2e   :  { %v127_v54 = vsel %vm84_vm0, %v123_v40, %v112_v50  ;;  %v129_v55 = vsel %vm86_vm1, %v123_v40, %v114_v51  ;;  %v468_v56 = vrot.slane %v873_v41, %v965_v27  ;;  %v481_v57 = vrot.slane %v477_v48, %v965_v27  ;;  %p898_p8 = por %p897_p7, %p896_p6 }
  0x2f   :  { %v860_v58 = vpack.c.bf16 %v129_v55, %v127_v54  ;;  %vm487_vm8 = vcmp.eq.s32.totalorder %v959_v21, %v485_v52  ;;  %vm489_vm9 = vcmp.eq.s32.totalorder %v968_v31, %v485_v52  ;;  %vm96_vm10 = vcmp.eq.s32.totalorder %v959_v21, %v91_v53 }
  0x30   :  { %v502_v59 = vsel %vm487_vm8, %v498_v43, 0.0  ;;  %v504_v60 = vsel %vm489_vm9, %v498_v43, 0.0  ;;  %vm98_vm11 = vcmp.eq.s32.totalorder %v968_v31, %v91_v53  ;;  %v111_v61 = vsel %vm96_vm10, %v104_v37, 0.0  ;;  %p899_p9 = pnand %p898_p8, %p892_p5 }
  0x31   :  { %861 = vmatprep.subr.bf16.mxu0 %v860_v58  ;;  %v517_v62 = vsel %vm474_vm6, %v513_v49, %v502_v59  ;;  %v519_v63 = vsel %vm476_vm7, %v513_v49, %v504_v60  ;;  %v113_v3 = vsel %vm98_vm11, %v104_v37, 0.0  ;;  %v126_v4 = vsel %vm83_vm2, %v119_v45, %v111_v61 }
  0x32   :  { %v864_v5 = vpack.c.bf16 %v519_v63, %v517_v62  ;;  %v128_v6 = vsel %vm85_vm3, %v119_v45, %v113_v3  ;;  %vm473_vm12 = vcmp.eq.s32.totalorder %v959_v21, %v468_v56  ;;  %vm475_vm13 = vcmp.eq.s32.totalorder %v968_v31, %v468_v56 }
  0x33   :  { %v862_v7 = vpack.c.bf16 %v128_v6, %v126_v4  ;;  %vm486_vm14 = vcmp.eq.s32.totalorder %v959_v21, %v481_v57  ;;  %vm488_vm15 = vcmp.eq.s32.totalorder %v968_v31, %v481_v57  ;;  %v494_v8 = vrot.slane %v461_v36, %v965_v27 }
  0x34   :  { %865 = vmatprep.subr.bf16.mxu1 %v864_v5  ;;  %v509_v9 = vrot.slane %v463_v42, %v965_v27  ;;  %vm193_vm0 = vcmask 130048   ;;  %v54_v35 = vstv %s831_s28  ;;  %v56_v36 = vstv %s832_s29 }
  0x35   :  { %863 = vmatpush1.bf16.msra.mxu0 %v862_v7  ;;  %v501_v10 = vsel %vm486_vm14, %v494_v8, 0.0  ;;  %v503_v11 = vsel %vm488_vm15, %v494_v8, 0.0  ;;  %v55_v37 = vmul.f32 %v54_v35, %v948_v1  ;;  %v57_v38 = vmul.f32 %v953_v2, %v56_v36 }
  0x36   :  { %v516_v13 = vsel %vm473_vm12, %v509_v9, %v501_v10  ;;  %v518_v14 = vsel %vm475_vm13, %v509_v9, %v503_v11  ;;  %v444_v39 = vstv %s847_s30  ;;  %v59_v41 = vstv %s833_s5 }
  0x37   :  { %v866_v15 = vpack.c.bf16 %v518_v14, %v516_v13  ;;  %v58_v40 = vadd.f32 %v57_v38, %v55_v37  ;;  %v445_v42 = vmul.f32 %v444_v39, %v948_v1  ;;  %v449_v46 = vstv %s849_s6 }
  0x38   :  { %836 = vmatmul.mubr.msk.f32.vlgmr.msra.gmra.mrb[0].mxu0 %vm193_vm0, %v185_v12 }
  0x39   :  { %867 = vmatpush1.bf16.msra.mxu1 %v866_v15  ;;  %288 = vmatprep.mubr.f32.mxu0 %v918_v0  ;;  %v60_v44 = vadd.f32 %v59_v41, %v58_v40 }
  0x3b   :  { %v64_v47 = vadd.f32 1.0, %v60_v44 }
  0x3c   :  { %852 = vmatmul.mubr.msk.f32.vlgmr.msra.gmra.mrb[0].mxu1 %vm193_vm0, %v575_v16  ;;  %837 = vmatmul.mubr.msk.f32.gmra.mrb[2].mxu0 %vm193_vm0, %v186_v17 }
  0x3d   :  { %677 = vmatprep.mubr.f32.mxu1 %v918_v0  ;;  %294 = vmatprep.mubr.f32.mxu0 %v918_v0  ;;  %v65_v49 = vmul.f32 8.0, %v64_v47 }
  0x3f   :  { %v835_v51 = vadd.f32 -0.5, %v65_v49 }
  0x40   :  { %853 = vmatmul.mubr.msk.f32.gmra.mrb[2].mxu1 %vm193_vm0, %v576_v18  ;;  %838 = vmatmul.mubr.msk.f32.gmra.mrb[4].mxu0 %vm193_vm0, %v187_v19 }
  0x41   :  { %683 = vmatprep.mubr.f32.mxu1 %v918_v0  ;;  %300 = vmatprep.mubr.f32.mxu0 %v918_v0  ;;  %v68_v53 = vfloor.f32 %v835_v51 }
  0x43   :  { %v870_v55 = vtrunc.f32 %v68_v53  ;;  %v72_v1 = vsub.f32 %v835_v51, %v68_v53 }
  0x44   :  { %854 = vmatmul.mubr.msk.f32.gmra.mrb[4].mxu1 %vm193_vm0, %v577_v20  ;;  %839 = vmatmul.mubr.msk.f32.gmra.mrb[6].mxu0 %vm193_vm0, %v188_v22 }
  0x45   :  { %689 = vmatprep.mubr.f32.mxu1 %v918_v0  ;;  %306 = vmatprep.mubr.f32.mxu0 %v918_v0  ;;  %v871_v57 = vcvt.f32.s32 %v870_v55  ;;  %v74_v62 = vsub.f32 1.0, %v72_v1  ;;  %v159_v3 = vrot.slane %v72_v1, %v965_v27  ;;  %v163_v9 = vrot.slane %v72_v1, %v962_v26 }
  0x47   :  { %v142_v59 = vadd.s32 1, %v871_v57  ;;  %v133_v63 = vrot.slane %v871_v57, %v965_v27  ;;  %v137_v7 = vrot.slane %v871_v57, %v962_v26  ;;  %v174_v8 = vrot.slane %v74_v62, %v965_v27 }
  0x48   :  { %855 = vmatmul.mubr.msk.f32.gmra.mrb[6].mxu1 %vm193_vm0, %v578_v23  ;;  %840 = vmatmul.mubr.msk.f32.gmra.mrb[8].mxu0 %vm193_vm0, %v189_v24  ;;  %v178_v15 = vrot.slane %v74_v62, %v962_v26 }
  0x49   :  { %695 = vmatprep.mubr.f32.mxu1 %v918_v0  ;;  %312 = vmatprep.mubr.f32.mxu0 %v918_v0  ;;  %v150_v4 = vrot.slane %v142_v59, %v962_v26  ;;  %vm138_vm2 = vcmp.eq.s32.totalorder %v959_v21, %v133_v63  ;;  %vm139_vm7 = vcmp.eq.s32.totalorder %v959_v21, %v137_v7 }
  0x4a   :  { %vm140_vm8 = vcmp.eq.s32.totalorder %v968_v31, %v133_v63  ;;  %vm141_vm10 = vcmp.eq.s32.totalorder %v968_v31, %v137_v7 }
  0x4b   :  { %vm152_vm3 = vcmp.eq.s32.totalorder %v959_v21, %v150_v4  ;;  %vm154_vm5 = vcmp.eq.s32.totalorder %v968_v31, %v150_v4 }
  0x4c   :  { %856 = vmatmul.mubr.msk.f32.gmra.mrb[8].mxu1 %vm193_vm0, %v579_v25  ;;  %841 = vmatmul.mubr.msk.f32.gmra.mrb[10].mxu0 %vm193_vm0, %v190_v28  ;;  %v167_v16 = vsel %vm152_vm3, %v163_v9, 0.0  ;;  %v169_v22 = vsel %vm154_vm5, %v163_v9, 0.0  ;;  %vm800_vm3 = vcmask 1045509   ;;  %vm415_vm5 = vcmask 1043459  }
  0x4d   :  { %701 = vmatprep.mubr.f32.mxu1 %v918_v0  ;;  %318 = vmatprep.mubr.f32.mxu0 %v918_v0 }
  0x50   :  { %857 = vmatmul.mubr.msk.f32.gmra.mrb[10].mxu1 %vm193_vm0, %v580_v29  ;;  %842 = vmatmul.mubr.msk.f32.gmra.mrb[12].mxu0 %vm193_vm0, %v191_v30  ;;  %v1132_v29 = vsel %vm139_vm7, %v178_v15, %v167_v16 }
  0x51   :  { %707 = vmatprep.mubr.f32.mxu1 %v918_v0  ;;  %324 = vmatprep.mubr.f32.mxu0 %v918_v0 }
  0x54   :  { %858 = vmatmul.mubr.msk.f32.gmra.mrb[12].mxu1 %vm193_vm0, %v581_v32  ;;  %843 = vmatmul.mubr.msk.f32.gmra.mrb[14].mxu0 %vm193_vm0, %v192_v33  ;;  %v1138_v33 = vsel %vm141_vm10, %v178_v15, %v169_v22 }
  0x55   :  { %713 = vmatprep.mubr.f32.mxu1 %v918_v0  ;;  %v446_v0 = vstv %s848_s4 }
  0x56   :  { %v447_v43 = vmul.f32 %v953_v2, %v446_v0  ;;  %v146_v2 = vrot.slane %v142_v59, %v965_v27 }
  0x58   :  { %859 = vmatmul.mubr.msk.f32.gmra.mrb[14].mxu1 %vm193_vm0, %v582_v34  ;;  %v448_v45 = vadd.f32 %v447_v43, %v445_v42  ;;  %vm151_vm1 = vcmp.eq.s32.totalorder %v959_v21, %v146_v2  ;;  %vm153_vm4 = vcmp.eq.s32.totalorder %v968_v31, %v146_v2 }
  0x59   :  { %v166_v10 = vsel %vm151_vm1, %v159_v3, 0.0  ;;  %v168_v18 = vsel %vm153_vm4, %v159_v3, 0.0  ;;  %vm411_vm1 = vcmask 1041409   ;;  %vm802_vm4 = vcmask 1046534  }
  0x5a   :  { %v450_v48 = vadd.f32 %v449_v46, %v448_v45  ;;  %v1122_v23 = vsel %vm138_vm2, %v174_v8, %v166_v10  ;;  %v1134_v30 = vsel %vm140_vm8, %v174_v8, %v168_v18  ;;  %vm413_vm2 = vcmask 1042434  }
  0x5c   :  { %v454_v50 = vadd.f32 1.0, %v450_v48 }
  0x5e   :  { %v455_v52 = vmul.f32 8.0, %v454_v50 }
  0x60   :  { %v851_v54 = vadd.f32 -0.5, %v455_v52 }
  0x62   :  { %v458_v56 = vfloor.f32 %v851_v54 }
  0x64   :  { %v874_v58 = vtrunc.f32 %v458_v56  ;;  %v462_v5 = vsub.f32 %v851_v54, %v458_v56 }
  0x66   :  { %v875_v60 = vcvt.f32.s32 %v874_v58  ;;  %v464_v11 = vsub.f32 1.0, %v462_v5  ;;  %v549_v14 = vrot.slane %v462_v5, %v965_v27  ;;  %v553_v20 = vrot.slane %v462_v5, %v962_v26 }
  0x68   :  { %v532_v61 = vadd.s32 1, %v875_v60  ;;  %v523_v12 = vrot.slane %v875_v60, %v965_v27  ;;  %v527_v17 = vrot.slane %v875_v60, %v962_v26  ;;  %v564_v24 = vrot.slane %v464_v11, %v965_v27 }
  0x69   :  { %v568_v32 = vrot.slane %v464_v11, %v962_v26 }
  0x6a   :  { %v536_v6 = vrot.slane %v532_v61, %v965_v27  ;;  %v540_v13 = vrot.slane %v532_v61, %v962_v26  ;;  %vm528_vm13 = vcmp.eq.s32.totalorder %v959_v21, %v523_v12  ;;  %vm530_vm14 = vcmp.eq.s32.totalorder %v968_v31, %v523_v12 }
  0x6b   :  { %vm529_vm15 = vcmp.eq.s32.totalorder %v959_v21, %v527_v17  ;;  %vm531_vm0 = vcmp.eq.s32.totalorder %v968_v31, %v527_v17 }
  0x6c   :  { %vm541_vm6 = vcmp.eq.s32.totalorder %v959_v21, %v536_v6  ;;  %vm543_vm9 = vcmp.eq.s32.totalorder %v968_v31, %v536_v6  ;;  %vm542_vm11 = vcmp.eq.s32.totalorder %v959_v21, %v540_v13  ;;  %vm544_vm12 = vcmp.eq.s32.totalorder %v968_v31, %v540_v13 }
  0x6d   :  { %v556_v28 = vsel %vm541_vm6, %v549_v14, 0.0  ;;  %v558_v27 = vsel %vm543_vm9, %v549_v14, 0.0  ;;  %v557_v35 = vsel %vm542_vm11, %v553_v20, 0.0  ;;  %v559_v37 = vsel %vm544_vm12, %v553_v20, 0.0 }
  0x6e   :  { %v1146_v26 = vsel %vm528_vm13, %v564_v24, %v556_v28  ;;  %v1149_v42 = vsel %vm530_vm14, %v564_v24, %v558_v27  ;;  %v1152_v44 = vsel %vm529_vm15, %v568_v32, %v557_v35  ;;  %v1154_v45 = vsel %vm531_vm0, %v568_v32, %v559_v37 }
  0x6f   :  { %vm804_vm6 = vcmask 1047559  }
 0x10b   :  { %v284_v19 = vpop.f32.mrb[0].mxu0 }
 0x10c   :  { %v286_v25 = vpop.f32.mrb[1].mxu0  ;;  %v331_v38 = vmul.f32 %v284_v19, %v1122_v23 }
 0x10d   :  { %v332_v41 = vmul.f32 %v286_v25, %v1132_v29 }
 0x10f   :  { %v673_v34 = vpop.f32.mrb[0].mxu1  ;;  %v290_v36 = vpop.f32.mrb[2].mxu0 }
 0x110   :  { %v675_v39 = vpop.f32.mrb[1].mxu1  ;;  %v333_v0 = vmul.f32 %v290_v36, %v1134_v30  ;;  %v292_v40 = vpop.f32.mrb[3].mxu0  ;;  %v720_v49 = vmul.f32 %v673_v34, %v1146_v26 }
 0x111   :  { %v334_v43 = vmul.f32 %v292_v40, %v1138_v33  ;;  %v721_v53 = vmul.f32 %v675_v39, %v1152_v44 }
 0x112   :  { %v347_v31 = vadd.f32 %v333_v0, %v331_v38 }
 0x113   :  { %v679_v46 = vpop.f32.mrb[2].mxu1  ;;  %v354_v47 = vadd.f32 %v334_v43, %v332_v41  ;;  %v296_v48 = vpop.f32.mrb[4].mxu0 }
 0x114   :  { %v348_v50 = vrot.slane %v347_v31, 4  ;;  %v722_v21 = vmul.f32 %v679_v46, %v1149_v42  ;;  %v681_v51 = vpop.f32.mrb[3].mxu1  ;;  %v298_v52 = vpop.f32.mrb[5].mxu0  ;;  %v335_v62 = vmul.f32 %v296_v48, %v1122_v23 }
 0x115   :  { %v355_v54 = vrot.slane %v354_v47, 4  ;;  %v723_v55 = vmul.f32 %v681_v51, %v1154_v45  ;;  %v336_v7 = vmul.f32 %v298_v52, %v1132_v29 }
 0x116   :  { %v349_v56 = vadd.f32 %v348_v50, %v347_v31  ;;  %v736_v57 = vadd.f32 %v722_v21, %v720_v49 }
 0x117   :  { %v356_v58 = vadd.f32 %v355_v54, %v354_v47  ;;  %v743_v59 = vadd.f32 %v723_v55, %v721_v53  ;;  %v685_v60 = vpop.f32.mrb[4].mxu1  ;;  %v302_v1 = vpop.f32.mrb[6].mxu0 }
 0x118   :  { %v350_v2 = vrot.slane %v349_v56, 2  ;;  %v737_v61 = vrot.slane %v736_v57, 4  ;;  %v687_v63 = vpop.f32.mrb[5].mxu1  ;;  %v337_v3 = vmul.f32 %v302_v1, %v1134_v30  ;;  %v304_v4 = vpop.f32.mrb[7].mxu0  ;;  %v724_v11 = vmul.f32 %v685_v60, %v1146_v26 }
 0x119   :  { %v357_v5 = vrot.slane %v356_v58, 2  ;;  %v744_v6 = vrot.slane %v743_v59, 4  ;;  %v338_v8 = vmul.f32 %v304_v4, %v1138_v33  ;;  %v725_v15 = vmul.f32 %v687_v63, %v1152_v44 }
 0x11a   :  { %v351_v9 = vadd.f32 %v350_v2, %v349_v56  ;;  %v738_v10 = vadd.f32 %v737_v61, %v736_v57  ;;  %v361_v12 = vadd.f32 %v337_v3, %v335_v62 }
 0x11b   :  { %v358_v13 = vadd.f32 %v357_v5, %v356_v58  ;;  %v745_v14 = vadd.f32 %v744_v6, %v743_v59  ;;  %v691_v16 = vpop.f32.mrb[6].mxu1  ;;  %v368_v17 = vadd.f32 %v338_v8, %v336_v7  ;;  %v308_v18 = vpop.f32.mrb[8].mxu0 }
 0x11c   :  { %v352_v19 = vrot.slane %v351_v9, 1  ;;  %v739_v20 = vrot.slane %v738_v10, 2  ;;  %v362_v22 = vrot.slane %v361_v12, 4  ;;  %v726_v24 = vmul.f32 %v691_v16, %v1149_v42  ;;  %v693_v25 = vpop.f32.mrb[7].mxu1  ;;  %v310_v28 = vpop.f32.mrb[9].mxu0 }
 0x11d   :  { %v359_v32 = vrot.slane %v358_v13, 1  ;;  %v746_v27 = vrot.slane %v745_v14, 2  ;;  %v369_v34 = vrot.slane %v368_v17, 4  ;;  %v727_v35 = vmul.f32 %v693_v25, %v1154_v45 }
 0x11e   :  { %v1168_v36 = vadd.f32 %v352_v19, %v351_v9  ;;  %v740_v37 = vadd.f32 %v739_v20, %v738_v10  ;;  %v363_v38 = vadd.f32 %v362_v22, %v361_v12  ;;  %v750_v39 = vadd.f32 %v726_v24, %v724_v11 }
 0x11f   :  { %v1170_v0 = vadd.f32 %v359_v32, %v358_v13  ;;  %v747_v40 = vadd.f32 %v746_v27, %v745_v14  ;;  %v370_v41 = vadd.f32 %v369_v34, %v368_v17  ;;  %v757_v43 = vadd.f32 %v727_v35, %v725_v15  ;;  %v697_v31 = vpop.f32.mrb[8].mxu1  ;;  %v314_v46 = vpop.f32.mrb[10].mxu0 }
 0x120   :  { %v741_v47 = vrot.slane %v740_v37, 1  ;;  %v364_v48 = vrot.slane %v363_v38, 2  ;;  %v751_v49 = vrot.slane %v750_v39, 4  ;;  %v339_v50 = vmul.f32 %v308_v18, %v1122_v23  ;;  %v699_v21 = vpop.f32.mrb[9].mxu1  ;;  %v316_v51 = vpop.f32.mrb[11].mxu0 }
 0x121   :  { %v748_v52 = vrot.slane %v747_v40, 1  ;;  %v371_v53 = vrot.slane %v370_v41, 2  ;;  %v758_v54 = vrot.slane %v757_v43, 4  ;;  %v728_v55 = vmul.f32 %v697_v31, %v1146_v26 }
 0x122   :  { %v1174_v56 = vadd.f32 %v741_v47, %v740_v37  ;;  %v365_v57 = vadd.f32 %v364_v48, %v363_v38  ;;  %v752_v58 = vadd.f32 %v751_v49, %v750_v39  ;;  %v340_v59 = vmul.f32 %v310_v28, %v1132_v29 }
 0x123   :  { %v1177_v60 = vadd.f32 %v748_v52, %v747_v40  ;;  %v372_v1 = vadd.f32 %v371_v53, %v370_v41  ;;  %v759_v2 = vadd.f32 %v758_v54, %v757_v43  ;;  %v729_v61 = vmul.f32 %v699_v21, %v1152_v44  ;;  %v703_v62 = vpop.f32.mrb[10].mxu1  ;;  %v320_v63 = vpop.f32.mrb[12].mxu0 }
 0x124   :  { %v366_v3 = vrot.slane %v365_v57, 1  ;;  %v753_v4 = vrot.slane %v752_v58, 2  ;;  %v341_v5 = vmul.f32 %v314_v46, %v1134_v30  ;;  %v730_v6 = vmul.f32 %v703_v62, %v1149_v42  ;;  %v705_v7 = vpop.f32.mrb[11].mxu1  ;;  %v322_v8 = vpop.f32.mrb[13].mxu0 }
 0x125   :  { %v373_v9 = vrot.slane %v372_v1, 1  ;;  %v760_v10 = vrot.slane %v759_v2, 2  ;;  %v342_v11 = vmul.f32 %v316_v51, %v1138_v33  ;;  %v731_v12 = vmul.f32 %v705_v7, %v1154_v45 }
 0x126   :  { %v1184_v13 = vadd.f32 %v366_v3, %v365_v57  ;;  %v754_v14 = vadd.f32 %v753_v4, %v752_v58  ;;  %v375_v15 = vadd.f32 %v341_v5, %v339_v50  ;;  %v764_v16 = vadd.f32 %v730_v6, %v728_v55 }
 0x127   :  { %v1186_v17 = vadd.f32 %v373_v9, %v372_v1  ;;  %v761_v18 = vadd.f32 %v760_v10, %v759_v2  ;;  %v382_v19 = vadd.f32 %v342_v11, %v340_v59  ;;  %v771_v20 = vadd.f32 %v731_v12, %v729_v61  ;;  %v709_v22 = vpop.f32.mrb[12].mxu1  ;;  %v326_v24 = vpop.f32.mrb[14].mxu0 }
 0x128   :  { %v755_v25 = vrot.slane %v754_v14, 1  ;;  %v376_v28 = vrot.slane %v375_v15, 4  ;;  %v765_v32 = vrot.slane %v764_v16, 4  ;;  %v343_v27 = vmul.f32 %v320_v63, %v1122_v23  ;;  %v711_v34 = vpop.f32.mrb[13].mxu1  ;;  %v328_v35 = vpop.f32.mrb[15].mxu0 }
 0x129   :  { %v762_v37 = vrot.slane %v761_v18, 1  ;;  %v383_v38 = vrot.slane %v382_v19, 4  ;;  %v772_v39 = vrot.slane %v771_v20, 4  ;;  %v732_v40 = vmul.f32 %v709_v22, %v1146_v26 }
 0x12a   :  { %v756_v41 = vadd.f32 %v755_v25, %v754_v14  ;;  %v377_v43 = vadd.f32 %v376_v28, %v375_v15  ;;  %v766_v31 = vadd.f32 %v765_v32, %v764_v16  ;;  %v344_v46 = vmul.f32 %v322_v8, %v1132_v29 }
 0x12b   :  { %v763_v47 = vadd.f32 %v762_v37, %v761_v18  ;;  %v384_v48 = vadd.f32 %v383_v38, %v382_v19  ;;  %v773_v49 = vadd.f32 %v772_v39, %v771_v20  ;;  %v733_v50 = vmul.f32 %v711_v34, %v1152_v44  ;;  %v715_v23 = vpop.f32.mrb[14].mxu1 }
 0x12c   :  { %v378_v21 = vrot.slane %v377_v43, 2  ;;  %v767_v51 = vrot.slane %v766_v31, 2  ;;  %v345_v52 = vmul.f32 %v326_v24, %v1134_v30  ;;  %v734_v26 = vmul.f32 %v715_v23, %v1149_v42  ;;  %v717_v53 = vpop.f32.mrb[15].mxu1 }
 0x12d   :  { %v385_v54 = vrot.slane %v384_v48, 2  ;;  %v774_v55 = vrot.slane %v773_v49, 2  ;;  %v346_v29 = vmul.f32 %v328_v35, %v1138_v33  ;;  %v735_v57 = vmul.f32 %v717_v53, %v1154_v45 }
 0x12e   :  { %v379_v58 = vadd.f32 %v378_v21, %v377_v43  ;;  %v768_v59 = vadd.f32 %v767_v51, %v766_v31  ;;  %v389_v1 = vadd.f32 %v345_v52, %v343_v27  ;;  %v778_v44 = vadd.f32 %v734_v26, %v732_v40 }
 0x12f   :  { %v386_v2 = vadd.f32 %v385_v54, %v384_v48  ;;  %v775_v61 = vadd.f32 %v774_v55, %v773_v49  ;;  %v396_v62 = vadd.f32 %v346_v29, %v344_v46  ;;  %v785_v63 = vadd.f32 %v735_v57, %v733_v50 }
 0x130   :  { %v380_v3 = vrot.slane %v379_v58, 1  ;;  %v769_v30 = vrot.slane %v768_v59, 1  ;;  %v390_v4 = vrot.slane %v389_v1, 4  ;;  %v779_v42 = vrot.slane %v778_v44, 4 }
 0x131   :  { %v387_v5 = vrot.slane %v386_v2, 1  ;;  %v776_v6 = vrot.slane %v775_v61, 1  ;;  %v397_v7 = vrot.slane %v396_v62, 4  ;;  %v786_v8 = vrot.slane %v785_v63, 4 }
 0x132   :  { %v381_v9 = vadd.f32 %v380_v3, %v379_v58  ;;  %v770_v33 = vadd.f32 %v769_v30, %v768_v59  ;;  %v391_v10 = vadd.f32 %v390_v4, %v389_v1  ;;  %v780_v45 = vadd.f32 %v779_v42, %v778_v44 }
 0x133   :  { %v388_v11 = vadd.f32 %v387_v5, %v386_v2  ;;  %v777_v12 = vadd.f32 %v776_v6, %v775_v61  ;;  %v398_v14 = vadd.f32 %v397_v7, %v396_v62  ;;  %v787_v15 = vadd.f32 %v786_v8, %v785_v63 }
 0x134   :  { %v392_v16 = vrot.slane %v391_v10, 2  ;;  %v781_v18 = vrot.slane %v780_v45, 2  ;;  %v412_v19 = vsel %vm411_vm1, %v1184_v13, %v1168_v36  ;;  %v417_v20 = vsel %vm411_vm1, %v1186_v17, %v1170_v0 }
 0x135   :  { %v399_v22 = vrot.slane %v398_v14, 2  ;;  %v788_v24 = vrot.slane %v787_v15, 2  ;;  %v414_v25 = vsel %vm413_vm2, %v381_v9, %v412_v19  ;;  %v418_v28 = vsel %vm413_vm2, %v388_v11, %v417_v20 }
 0x136   :  { %v393_v32 = vadd.f32 %v392_v16, %v391_v10  ;;  %v782_v27 = vadd.f32 %v781_v18, %v780_v45  ;;  %v801_v34 = vsel %vm800_vm3, %v756_v41, %v1174_v56  ;;  %v806_v35 = vsel %vm800_vm3, %v763_v47, %v1177_v60 }
 0x137   :  { %v400_v37 = vadd.f32 %v399_v22, %v398_v14  ;;  %v789_v36 = vadd.f32 %v788_v24, %v787_v15  ;;  %v803_v13 = vsel %vm802_vm4, %v770_v33, %v801_v34  ;;  %v807_v0 = vsel %vm802_vm4, %v777_v12, %v806_v35 }
 0x138   :  { %v394_v17 = vrot.slane %v393_v32, 1  ;;  %v783_v38 = vrot.slane %v782_v27, 1 }
 0x139   :  { %v401_v39 = vrot.slane %v400_v37, 1  ;;  %v790_v40 = vrot.slane %v789_v36, 1 }
 0x13a   :  { %v395_v43 = vadd.f32 %v394_v17, %v393_v32  ;;  %v784_v31 = vadd.f32 %v783_v38, %v782_v27 }
 0x13b   :  { %v402_v56 = vadd.f32 %v401_v39, %v400_v37  ;;  %v791_v41 = vadd.f32 %v790_v40, %v789_v36 }
 0x13c   :  { %v416_v46 = vsel %vm415_vm5, %v395_v43, %v414_v25  ;;  %v805_v60 = vsel %vm804_vm6, %v784_v31, %v803_v13 }
 0x13d   :  { %v419_v47 = vsel %vm415_vm5, %v402_v56, %v418_v28  ;;  %422 = vst [vmem:[#allocation5] sm:$0xf] %v416_v46  ;;  %v808_v48 = vsel %vm804_vm6, %v791_v41, %v807_v0  ;;  %811 = vst [vmem:[#allocation5] sm:$0xf0] %v805_v60 }
 0x13e   :  { %423 = vst [vmem:[#allocation5 + $0x8] sm:$0xf] %v419_v47  ;;  %812 = vst [vmem:[#allocation5 + $0x8] sm:$0xf0] %v808_v48 }
 0x13f   :  { %902 = shalt.err (!%p899_p9)
}
 0x140   :  { %s903_s11 = scalar_lea.hbm %s1225_s3, 256 }
 0x141   :  { %p904_p10 = scmp.ne.s32.totalorder %s1225_s3, %s903_s11  ;;  %p907_p11 = scmp.lt.u32.totalorder %s903_s11, %s1225_s3 }
 0x143   :  { %p909_p12 = pnand %p907_p11, %p904_p10 }
 0x145   :  { %912 = shalt.err (!%p909_p12)
}
 0x146   :  { %822 = dma.vmem_to_hbm [thread:$0]  %s820_s7, 256, %s1225_s3, [#allocation3]  }
 0x147   :  { %915 = dma.done.wait [#allocation3], 256  }
 0x148   :  { %916 = vsyncadd [#allocation3], 4294967040 }
 0x149   :  { %826 = vsyncpa [#allocation3], 1 }
 0x14a   :  { %827 = vsyncpa [#allocation4], 1 }

</bundles_post_ra>
